<compile_context>
chip_gen: v7x
topology: tpu7x:2x2x1
jax: 0.10.0
libtpu: 0.0.40
codegen_flags: <defaults>
</compile_context>

<pallas_src>
import functools
import math

import jax
import jax.numpy as jnp
from jax.experimental import pallas as pl
from jax.experimental.pallas import tpu as pltpu

IN_FEATURES = 256


def _round_up(n, m):
    return ((n + m - 1) // m) * m


def _linear_kernel(x_ref, w_ref, b_ref, o_ref):
    # x_ref: (tm, 256) compute_dtype, w_ref: (256, tn) compute_dtype,
    # b_ref: (1, tn) f32, o_ref: (tm, tn) f32
    acc = jnp.dot(x_ref[...], w_ref[...], preferred_element_type=jnp.float32)
    o_ref[...] = (acc + b_ref[...]).astype(o_ref.dtype)


@functools.partial(jax.jit, static_argnames=("compute_dtype", "tm", "tn"))
def classifier_forward(x, weight_t, bias, *, compute_dtype=jnp.bfloat16,
                       tm=None, tn=None):
    """Pallas equivalent of classifier.forward: x @ weight_t + bias.

    Args:
      x:        (B, 256) float32
      weight_t: (256, num_classes) float32   (pre-transposed PyTorch weight)
      bias:     (num_classes,)     float32
      compute_dtype: dtype fed to the MXU (bf16 halves weight HBM traffic on
                     v6e/v7x; accumulation is always f32).
    Returns:
      (B, num_classes) float32
    """
    B, K = x.shape
    K2, C = weight_t.shape
    assert K == IN_FEATURES and K2 == IN_FEATURES
    assert bias.shape == (C,)

    # --- tile selection ------------------------------------------------------
    # Class tiles: lane-dense (multiple of 128) -> unmasked vst stores.
    # 256-wide tiles suit the v6e/v7x 256x256 MXU; bounded so (256, tn)
    # double-buffered weight tiles stay tiny even under v7x's 64 MiB VMEM.
    if tn is None:
        tn = min(512, _round_up(C, 128))
    assert tn % 128 == 0
    C_pad = _round_up(max(C, tn), tn)

    # Batch tiles: multiple of 8 (sublane), large enough to amortize the
    # ~0.35 us per-grid-step overhead.
    if tm is None:
        tm = min(512, _round_up(B, 8))
    assert tm % 8 == 0
    B_pad = _round_up(max(B, tm), tm)

    # --- pad + cast (wrapper-side glue, cheap/one XLA fusion) ----------------
    x_p = jnp.pad(x, ((0, B_pad - B), (0, 0))).astype(compute_dtype)
    w_p = jnp.pad(weight_t, ((0, 0), (0, C_pad - C))).astype(compute_dtype)
    b_p = jnp.pad(bias, (0, C_pad - C)).reshape(1, C_pad).astype(jnp.float32)

    grid = (B_pad // tm, C_pad // tn)

    bytes_accessed = (x_p.size * x_p.dtype.itemsize
                      + w_p.size * w_p.dtype.itemsize * grid[0]
                      + b_p.size * 4
                      + B_pad * C_pad * 4)
    cost = pl.CostEstimate(flops=2 * B_pad * K * C_pad,
                           transcendentals=0,
                           bytes_accessed=bytes_accessed)

    out_p = pl.pallas_call(
        _linear_kernel,
        out_shape=jax.ShapeDtypeStruct((B_pad, C_pad), jnp.float32),
        grid_spec=pltpu.PrefetchScalarGridSpec(
            num_scalar_prefetch=0,
            grid=grid,
            in_specs=[
                pl.BlockSpec((tm, K), lambda i, j: (i, 0)),    # x tile
                pl.BlockSpec((K, tn), lambda i, j: (0, j)),    # weight tile
                pl.BlockSpec((1, tn), lambda i, j: (0, j)),    # bias tile
            ],
            out_specs=pl.BlockSpec((tm, tn), lambda i, j: (i, j)),
        ),
        compiler_params=pltpu.CompilerParams(
            # Both axes independent -> megacore sharding on v7x.
            dimension_semantics=("parallel", "parallel"),
            vmem_limit_bytes=32 * 1024 * 1024,
        ),
        cost_estimate=cost,
    )(x_p, w_p, b_p)

    return out_p[:B, :C]


def init_params(key, num_classes):
    """Returns (weight_t, bias) with weight stored pre-transposed (256, C)."""
    kw, kb = jax.random.split(key)
    # kaiming_normal_ on (C, 256): fan_in=256, gain=sqrt(2) -> std = sqrt(2/256)
    std = math.sqrt(2.0 / IN_FEATURES)
    weight = std * jax.random.normal(kw, (num_classes, IN_FEATURES), jnp.float32)
    # PyTorch Linear default bias init: U(-1/sqrt(fan_in), 1/sqrt(fan_in))
    bound = 1.0 / math.sqrt(IN_FEATURES)
    bias = jax.random.uniform(kb, (num_classes,), jnp.float32, -bound, bound)
    # Transpose ONCE at init (not in the hot forward path).
    return weight.T, bias


if __name__ == "__main__":
    key = jax.random.PRNGKey(0)
    k_x, k_p = jax.random.split(key)

    batch = 8
    num_classes = 16

    x = jax.random.normal(k_x, (batch, IN_FEATURES), jnp.float32)
    weight_t, bias = init_params(k_p, num_classes)

    ref = x @ weight_t + bias

    # f32 compute path: bit-accurate check.
    out_f32 = jax.block_until_ready(
        classifier_forward(x, weight_t, bias, compute_dtype=jnp.float32))
    assert out_f32.shape == (batch, num_classes)
    assert jnp.allclose(out_f32, ref, atol=1e-4, rtol=1e-4)

    # bf16 MXU path (default, halves weight HBM traffic on v6e/v7x).
    out_bf16 = jax.block_until_ready(classifier_forward(x, weight_t, bias))
    assert out_bf16.shape == (batch, num_classes)
    assert jnp.allclose(out_bf16, ref, atol=5e-2, rtol=5e-2)

    print("KERNEL_OK")
</pallas_src>

<mosaic_0001>
module attributes {stable_mosaic.version = 11 : i64} {
  func.func @_linear_kernel(%arg0: i32, %arg1: i32, %arg2: memref<8x256xf32, #tpu.memory_space<vmem>>, %arg3: memref<256x128xf32, #tpu.memory_space<vmem>>, %arg4: memref<1x128xf32, #tpu.memory_space<vmem>>, %arg5: memref<8x128xf32, #tpu.memory_space<vmem>>) attributes {dimension_semantics = [#tpu.dimension_semantics<parallel>, #tpu.dimension_semantics<parallel>], iteration_bounds = array<i64: 1, 1>, scalar_prefetch = 0 : i64, scratch_operands = 0 : i64, tpu.core_type = #tpu.core_type<tc>, window_params = [{transform_indices = @transform_0, window_bounds = array<i64: 8, 256>}, {transform_indices = @transform_1, window_bounds = array<i64: 256, 128>}, {transform_indices = @transform_2, window_bounds = array<i64: 1, 128>}, {transform_indices = @transform_3, window_bounds = array<i64: 8, 128>}]} {
    %c0 = arith.constant 0 : index
    %c0_0 = arith.constant 0 : index
    %0 = vector.load %arg2[%c0, %c0_0] : memref<8x256xf32, #tpu.memory_space<vmem>>, vector<8x256xf32>
    %c0_1 = arith.constant 0 : index
    %c0_2 = arith.constant 0 : index
    %1 = vector.load %arg3[%c0_1, %c0_2] : memref<256x128xf32, #tpu.memory_space<vmem>>, vector<256x128xf32>
    %cst = arith.constant dense<0.000000e+00> : vector<8x128xf32>
    %2 = tpu.matmul %0, %1, %cst {dimension_numbers = #tpu.dot_dimension_numbers<[1], [0], [0], [1], [0, 0, 1, 1], [], []>} : vector<8x256xf32>, vector<256x128xf32>, vector<8x128xf32> -> vector<8x128xf32>
    %c0_3 = arith.constant 0 : index
    %c0_4 = arith.constant 0 : index
    %3 = vector.load %arg4[%c0_3, %c0_4] : memref<1x128xf32, #tpu.memory_space<vmem>>, vector<1x128xf32>
    %4 = vector.broadcast %3 : vector<1x128xf32> to vector<8x128xf32>
    %5 = arith.addf %2, %4 : vector<8x128xf32>
    %c0_5 = arith.constant 0 : index
    %c0_6 = arith.constant 0 : index
    %6 = vector.load %arg5[%c0_5, %c0_6] : memref<8x128xf32, #tpu.memory_space<vmem>>, vector<8x128xf32>
    tpu.vector_store %arg5[%c0_5, %c0_6], %5 {strides = array<i32>} : memref<8x128xf32, #tpu.memory_space<vmem>>, vector<8x128xf32>,
    return
  }
  func.func @transform_0(%arg0: i32, %arg1: i32) -> (i32, i32) {
    %c0_i32 = arith.constant 0 : i32
    %c0_i32_0 = arith.constant 0 : i32
    return %arg0, %c0_i32 : i32, i32
  }
  func.func @transform_1(%arg0: i32, %arg1: i32) -> (i32, i32) {
    %c0_i32 = arith.constant 0 : i32
    %c0_i32_0 = arith.constant 0 : i32
    return %c0_i32, %arg1 : i32, i32
  }
  func.func @transform_2(%arg0: i32, %arg1: i32) -> (i32, i32) {
    %c0_i32 = arith.constant 0 : i32
    %c0_i32_0 = arith.constant 0 : i32
    return %c0_i32, %arg1 : i32, i32
  }
  func.func @transform_3(%arg0: i32, %arg1: i32) -> (i32, i32) {
    %c0_i32 = arith.constant 0 : i32
    return %arg0, %arg1 : i32, i32
  }
}

</mosaic_0001>

<bundles_post_ra>
// kernel: classifier_forward.1
= control target key start
LH: loop header
LB: loop body
LE: loop exit
PB: predicated region body
PF: predicated region fallthrough
CT: control target
= control target key end

     0   :  { %s372_s0 = inlined_call_operand.vmem [shape: f32[8,256], index: 0, kind: input, shape index: {}]   ;;  %s373_s1 = inlined_call_operand.vmem [shape: f32[256,128], index: 1, kind: input, shape index: {}]   ;;  %s374_s2 = inlined_call_operand.vmem [shape: f32[1,128], index: 2, kind: input, shape index: {}]   ;;  %s375_s3 = inlined_call_operand.hbm [shape: f32[8,128], index: 3, kind: output, shape index: {}]  }
   0x1   :  { %v33_v0 = vld [vmem:[%s373_s1 + $0x80] sm:$0xff]  ;;  %v34_v1 = vld [vmem:[%s373_s1 + $0x88] sm:$0xff]  ;;  %v35_v5 = vld [vmem:[%s373_s1 + $0x90] sm:$0xff] }
   0x2   :  { %v17_v2 = vld [vmem:[%s373_s1] sm:$0xff]  ;;  %v177_v3 = vpack.c.bf16 %v34_v1, %v33_v0  ;;  %v18_v4 = vld [vmem:[%s373_s1 + $0x8] sm:$0xff]  ;;  %v36_v6 = vld [vmem:[%s373_s1 + $0x98] sm:$0xff] }
   0x3   :  { %v179_v7 = vpack.c.bf16 %v18_v4, %v17_v2  ;;  %v181_v8 = vpack.c.bf16 %v36_v6, %v35_v5  ;;  %v19_v9 = vld [vmem:[%s373_s1 + $0x10] sm:$0xff]  ;;  %v20_v10 = vld [vmem:[%s373_s1 + $0x18] sm:$0xff]  ;;  %v37_v11 = vld [vmem:[%s373_s1 + $0xa0] sm:$0xff] }
   0x4   :  { %178 = vmatprep.subr.bf16.mxu0 %v177_v3  ;;  %v38_v12 = vld [vmem:[%s373_s1 + $0xa8] sm:$0xff]  ;;  %v183_v13 = vpack.c.bf16 %v20_v10, %v19_v9  ;;  %v21_v15 = vld [vmem:[%s373_s1 + $0x20] sm:$0xff]  ;;  %v39_v17 = vld [vmem:[%s373_s1 + $0xb0] sm:$0xff] }
   0x5   :  { %180 = vmatpush3.bf16.msra.mxu0 %v179_v7  ;;  %v185_v14 = vpack.c.bf16 %v38_v12, %v37_v11  ;;  %v22_v16 = vld [vmem:[%s373_s1 + $0x28] sm:$0xff]  ;;  %v40_v18 = vld [vmem:[%s373_s1 + $0xb8] sm:$0xff]  ;;  %v23_v21 = vld [vmem:[%s373_s1 + $0x30] sm:$0xff] }
   0x6   :  { %182 = vmatprep.subr.bf16.mxu0 %v181_v8  ;;  %v187_v19 = vpack.c.bf16 %v22_v16, %v21_v15  ;;  %v189_v20 = vpack.c.bf16 %v40_v18, %v39_v17  ;;  %v24_v22 = vld [vmem:[%s373_s1 + $0x38] sm:$0xff]  ;;  %v41_v23 = vld [vmem:[%s373_s1 + $0xc0] sm:$0xff]  ;;  %v42_v24 = vld [vmem:[%s373_s1 + $0xc8] sm:$0xff] }
   0x7   :  { %v16_v25 = vld [vmem:[%s372_s0 + $0x8] sm:$0xff] }
   0x8   :  { %120 = vmatprep.mubr.f32.mxu0 %v16_v25 }
   0x9   :  { %184 = vmatpush3.bf16.msra.mxu0 %v183_v13 }
   0xa   :  { %186 = vmatprep.subr.bf16.mxu0 %v185_v14 }
   0xb   :  { %8 = vsyncpa [#allocation3], 0  ;;  %v191_v26 = vpack.c.bf16 %v24_v22, %v23_v21  ;;  %v193_v27 = vpack.c.bf16 %v42_v24, %v41_v23  ;;  %v25_v28 = vld [vmem:[%s373_s1 + $0x40] sm:$0xff]  ;;  %v26_v29 = vld [vmem:[%s373_s1 + $0x48] sm:$0xff]  ;;  %s234_s28 = smov [#allocation2]  }
   0xc   :  { %v43_v30 = vld [vmem:[%s373_s1 + $0xd0] sm:$0xff]  ;;  %v44_v31 = vld [vmem:[%s373_s1 + $0xd8] sm:$0xff]  ;;  %v195_v32 = vpack.c.bf16 %v26_v29, %v25_v28  ;;  %v45_v36 = vld [vmem:[%s373_s1 + $0xe0] sm:$0xff]  ;;  %s133_s29 = sshll.u32 %s234_s28, 4  ;;  %s134_s29 = int_to_ptr.vmem [resolvable:$true] %s133_s29 }
   0xd   :  { %188 = vmatpush3.bf16.msra.mxu0 %v187_v19  ;;  %v197_v33 = vpack.c.bf16 %v44_v31, %v43_v30  ;;  %v27_v34 = vld [vmem:[%s373_s1 + $0x50] sm:$0xff]  ;;  %v28_v35 = vld [vmem:[%s373_s1 + $0x58] sm:$0xff]  ;;  %v46_v37 = vld [vmem:[%s373_s1 + $0xe8] sm:$0xff]  ;;  %p215_p1 = scmp.lt.s32.totalorder %s134_s29, %s134_s29 }
   0xe   :  { %190 = vmatprep.subr.bf16.mxu0 %v189_v20  ;;  %v199_v38 = vpack.c.bf16 %v28_v35, %v27_v34  ;;  %v201_v39 = vpack.c.bf16 %v46_v37, %v45_v36  ;;  %v29_v40 = vld [vmem:[%s373_s1 + $0x60] sm:$0xff]  ;;  %v30_v41 = vld [vmem:[%s373_s1 + $0x68] sm:$0xff]  ;;  %v47_v42 = vld [vmem:[%s373_s1 + $0xf0] sm:$0xff] }
   0xf   :  { %v48_v43 = vld [vmem:[%s373_s1 + $0xf8] sm:$0xff]  ;;  %v203_v44 = vpack.c.bf16 %v30_v41, %v29_v40  ;;  %v31_v46 = vld [vmem:[%s373_s1 + $0x70] sm:$0xff]  ;;  %v15_v49 = vld [vmem:[%s372_s0] sm:$0xff] }
  0x10   :  { %v205_v45 = vpack.c.bf16 %v48_v43, %v47_v42  ;;  %v32_v47 = vld [vmem:[%s373_s1 + $0x78] sm:$0xff]  ;;  %v141_v52 = vld [vmem:[%s374_s2] ss:$0 sm:$0xff]  ;;  %s210_s1 = scalar_lea.vmem %s134_s29, 128 }
  0x11   :  { %192 = vmatpush3.bf16.msra.mxu0 %v191_v26  ;;  %v207_v48 = vpack.c.bf16 %v32_v47, %v31_v46  ;;  %p211_p0 = scmp.ne.s32.totalorder %s134_s29, %s210_s1  ;;  %p216_p2 = scmp.lt.s32.totalorder %s210_s1, %s210_s1 }
  0x12   :  { %194 = vmatprep.subr.bf16.mxu0 %v193_v27 }
  0x13   :  { %p217_p3 = por %p216_p2, %p215_p1 }
  0x15   :  { %196 = vmatpush3.bf16.msra.mxu0 %v195_v32  ;;  %p218_p4 = pnand %p217_p3, %p211_p0 }
  0x16   :  { %198 = vmatprep.subr.bf16.mxu0 %v197_v33 }
  0x19   :  { %200 = vmatpush3.bf16.msra.mxu0 %v199_v38 }
  0x1a   :  { %202 = vmatprep.subr.bf16.mxu0 %v201_v39 }
  0x1d   :  { %204 = vmatpush3.bf16.msra.mxu0 %v203_v44 }
  0x1e   :  { %206 = vmatprep.subr.bf16.mxu0 %v205_v45 }
  0x21   :  { %208 = vmatpush3.bf16.msra.mxu0 %v207_v48 }
  0x24   :  { %121 = vmatmul.mubr.f32.vlgmr.msra.gmra.mrb[0].mxu0 %v15_v49 }
  0xf7   :  { %v174_v50 = vpop.f32.mrb[0].mxu0 }
  0xf8   :  { %v175_v51 = vpop.f32.mrb[1].mxu0 }
  0xf9   :  { %v176_v53 = vadd.f32 %v175_v51, %v174_v50 }
  0xfb   :  { %v123_v54 = vadd.f32 %v176_v53, %v141_v52 }
  0xfd   :  { %126 = vst [vmem:[#allocation2] sm:$0xff] %v123_v54 }
  0xfe   :  { %221 = shalt.err (!%p218_p4)
}
  0xff   :  { %s222_s4 = scalar_lea.hbm %s375_s3, 128 }
 0x100   :  { %p223_p5 = scmp.ne.s32.totalorder %s375_s3, %s222_s4  ;;  %p226_p6 = scmp.lt.u32.totalorder %s222_s4, %s375_s3 }
 0x102   :  { %p228_p7 = pnand %p226_p6, %p223_p5 }
 0x104   :  { %231 = shalt.err (!%p228_p7)
}
 0x105   :  { %136 = dma.vmem_to_hbm [thread:$0]  %s134_s29, 128, %s375_s3, [#allocation3]  }
 0x106   :  { %232 = dma.done.wait [#allocation3], 128  }
 0x107   :  { %233 = vsyncadd [#allocation3], 4294967168 }
 0x108   :  { %140 = vsyncpa [#allocation3], 1 }

</bundles_post_ra>
